<compile_context>
chip_gen: v5e
topology: v5e:2x2
jax: 0.10.0
libtpu: 0.0.40
codegen_flags: <defaults>
</compile_context>

<pallas_src>
import functools

import jax
import jax.numpy as jnp
from jax.experimental import pallas as pl
from jax.experimental.pallas import tpu as pltpu


def _round_up(x, m):
    return (x + m - 1) // m * m


def _powerprop(w, alpha):
    """sign(w) * |w|**alpha, with a cheap exact path for alpha == 1.5."""
    if alpha == 1.0:
        return w
    if alpha == 1.5:
        return w * jnp.sqrt(jnp.abs(w))   # avoids exp/log pow and log(0)
    return jnp.sign(w) * jnp.power(jnp.abs(w), alpha)


def _pick_imgs_per_step(n, bytes_per_img, budget=2 << 20):
    """Largest divisor of n whose packed activation block stays small."""
    best = 1
    for k in range(1, n + 1):
        if n % k == 0 and k * bytes_per_img <= budget:
            best = k
    return best


def swat_conv2d_kernel(x_ref, w_ref, o_ref, *, taps, p_out, imgs, per_tap):
    """One grid step = `imgs` images, one (or KH*KW) MXU matmul(s).

    x_ref: (imgs, Cpad, LP)    bf16 zero-padded, spatially-flattened input
    w_ref: (O, KH*KW*Cpad)     bf16 powerprop weight, tap-major / channel-minor
    o_ref: (imgs, O, P)        conv output in the padded-width flat frame
    """
    c_pad = x_ref.shape[1]

    def tap_row(s):
        # One conv tap = constant lane shift; images laid side-by-side in lanes
        # (each image starts at a multiple of p_out, a multiple of 128).
        return jnp.concatenate(
            [x_ref[g, :, s:s + p_out] for g in range(imgs)], axis=1)

    if per_tap:
        # Cpad >= 128: each per-tap matmul already fills the MXU K dim, so skip
        # the 9x im2col buffer and accumulate tap by tap in f32.
        acc = jnp.zeros((w_ref.shape[0], imgs * p_out), jnp.float32)
        for t, s in enumerate(taps):
            wt = w_ref[:, t * c_pad:(t + 1) * c_pad]
            acc = acc + jnp.dot(wt, tap_row(s),
                                preferred_element_type=jnp.float32)
    else:
        # Tiny Cpad: build the full im2col block (tap-major, channel-minor)
        # and do a single matmul.
        patches = jnp.concatenate([tap_row(s) for s in taps], axis=0)
        acc = jnp.dot(w_ref[...], patches, preferred_element_type=jnp.float32)

    # Lane-aligned (multiple-of-128) per-image stores; no reshape/transpose.
    for g in range(imgs):
        o_ref[g] = acc[:, g * p_out:(g + 1) * p_out].astype(o_ref.dtype)


def swat_conv2d_forward(x_nchw, weight_oihw, alpha,
                        stride=1, padding=1, dilation=1, groups=1):
    assert stride == 1 and dilation == 1 and groups == 1, \
        "kernel implements the SWATConv2D default conv config"
    N, C, H, W = x_nchw.shape
    O, Cw, KH, KW = weight_oihw.shape
    assert Cw == C
    out_dtype = x_nchw.dtype

    hp, wp = H + 2 * padding, W + 2 * padding
    out_h, out_w = hp - KH + 1, wp - KW + 1

    c_pad = _round_up(C, 16)                       # bf16 (16,128) sublane tile
    p_out = _round_up(out_h * wp, 128)             # lane-dense output frame
    max_shift = (KH - 1) * wp + (KW - 1)
    # Total padded rows: enough for the conv halo AND the flat-frame tail, so a
    # single jnp.pad (fused with the bf16 cast) covers everything.
    rows = max(hp, -(-(p_out + max_shift) // wp))
    lp = rows * wp

    # ---- wrapper-side prep: one fused cast+pad pass over the activations ----
    x = jnp.pad(x_nchw.astype(jnp.bfloat16),
                ((0, 0), (0, c_pad - C),
                 (padding, rows - H - padding), (padding, padding)))
    x = x.reshape(N, c_pad, lp)

    pw = _powerprop(weight_oihw.astype(jnp.float32), float(alpha))
    pw = jnp.pad(pw, ((0, 0), (0, c_pad - C), (0, 0), (0, 0)))
    pw2 = jnp.transpose(pw, (0, 2, 3, 1)).reshape(O, KH * KW * c_pad)
    pw2 = pw2.astype(jnp.bfloat16)                 # tiny; negligible HBM cost

    imgs = _pick_imgs_per_step(N, c_pad * lp * 2)  # bf16 bytes per image
    taps = tuple(kh * wp + kw for kh in range(KH) for kw in range(KW))
    kernel = functools.partial(swat_conv2d_kernel, taps=taps, p_out=p_out,
                               imgs=imgs, per_tap=(c_pad >= 128))

    out_flat = pl.pallas_call(
        kernel,
        out_shape=jax.ShapeDtypeStruct((N, O, p_out), out_dtype),
        grid_spec=pltpu.PrefetchScalarGridSpec(
            num_scalar_prefetch=0,
            grid=(N // imgs,),
            in_specs=[
                pl.BlockSpec((imgs, c_pad, lp), lambda n: (n, 0, 0)),
                pl.BlockSpec((O, KH * KW * c_pad), lambda n: (0, 0)),
            ],
            out_specs=pl.BlockSpec((imgs, O, p_out), lambda n: (n, 0, 0)),
        ),
        compiler_params=pltpu.CompilerParams(
            dimension_semantics=("parallel",),
            vmem_limit_bytes=32 * 1024 * 1024),
    )(x, pw2)

    # Drop padded-width columns and reshape straight to NCHW (no transpose).
    out = out_flat[:, :, :out_h * wp].reshape(N, O, out_h, wp)
    return out[:, :, :, :out_w]
    # TODO(synk): bias add omitted — default SWATConv2D config has bias=False.


def reference_forward(x_nchw, weight_oihw, alpha, padding=1):
    pw = jnp.sign(weight_oihw) * jnp.power(jnp.abs(weight_oihw), alpha)
    return jax.lax.conv_general_dilated(
        x_nchw, pw, window_strides=(1, 1),
        padding=((padding, padding), (padding, padding)),
        dimension_numbers=("NCHW", "OIHW", "NCHW"))


if __name__ == "__main__":
    # Module config: alpha=1.5, in_channels=4, out_channels=8, kernel_size=3,
    # stride=1, padding=1, dilation=1, groups=1, bias=False.
    alpha = 1.5
    in_channels, out_channels, ksize = 4, 8, 3
    batch, spatial = 2, 16

    key = jax.random.PRNGKey(0)
    kx, kw = jax.random.split(key)
    x = jax.random.normal(kx, (batch, in_channels, spatial, spatial),
                          dtype=jnp.float32)
    weight = jax.random.normal(
        kw, (out_channels, in_channels, ksize, ksize), dtype=jnp.float32) * 0.1

    out = jax.block_until_ready(swat_conv2d_forward(x, weight, alpha))
    ref = jax.block_until_ready(reference_forward(x, weight, alpha))

    assert out.shape == (batch, out_channels, spatial, spatial), out.shape
    max_err = float(jnp.max(jnp.abs(out - ref)))
    # bf16 MXU operands with f32 accumulation: tolerance covers the input
    # quantization (reference conv is full f32).
    assert jnp.allclose(out, ref, atol=2e-2, rtol=2e-2), max_err

    print("KERNEL_OK")
</pallas_src>

<mosaic_0001>
module attributes {stable_mosaic.version = 11 : i64} {
  func.func @swat_conv2d_kernel(%arg0: i32, %arg1: memref<2x16x432xbf16, #tpu.memory_space<vmem>>, %arg2: memref<8x144xbf16, #tpu.memory_space<vmem>>, %arg3: memref<2x8x384xf32, #tpu.memory_space<vmem>>) attributes {dimension_semantics = [#tpu.dimension_semantics<parallel>], iteration_bounds = array<i64: 1>, scalar_prefetch = 0 : i64, scratch_operands = 0 : i64, tpu.core_type = #tpu.core_type<tc>, window_params = [{transform_indices = @transform_0, window_bounds = array<i64: 2, 16, 432>}, {pipeline_mode = #tpu.pipeline_mode<synchronous>, transform_indices = @transform_1, window_bounds = array<i64: 8, 144>}, {transform_indices = @transform_2, window_bounds = array<i64: 2, 8, 384>}]} {
    %c0 = arith.constant 0 : index
    %c0_0 = arith.constant 0 : index
    %c0_1 = arith.constant 0 : index
    %0 = vector.load %arg1[%c0, %c0_0, %c0_1] : memref<2x16x432xbf16, #tpu.memory_space<vmem>>, vector<1x16x384xbf16>
    %1 = vector.shape_cast %0 : vector<1x16x384xbf16> to vector<16x384xbf16>
    %c1 = arith.constant 1 : index
    %c0_2 = arith.constant 0 : index
    %c0_3 = arith.constant 0 : index
    %2 = vector.load %arg1[%c1, %c0_2, %c0_3] : memref<2x16x432xbf16, #tpu.memory_space<vmem>>, vector<1x16x384xbf16>
    %3 = vector.shape_cast %2 : vector<1x16x384xbf16> to vector<16x384xbf16>
    %4 = tpu.concatenate %1, %3 in 1 : vector<16x384xbf16>, vector<16x384xbf16> -> vector<16x768xbf16>
    %c0_4 = arith.constant 0 : index
    %c0_5 = arith.constant 0 : index
    %c1_6 = arith.constant 1 : index
    %5 = vector.load %arg1[%c0_4, %c0_5, %c1_6] : memref<2x16x432xbf16, #tpu.memory_space<vmem>>, vector<1x16x384xbf16>
    %6 = vector.shape_cast %5 : vector<1x16x384xbf16> to vector<16x384xbf16>
    %c1_7 = arith.constant 1 : index
    %c0_8 = arith.constant 0 : index
    %c1_9 = arith.constant 1 : index
    %7 = vector.load %arg1[%c1_7, %c0_8, %c1_9] : memref<2x16x432xbf16, #tpu.memory_space<vmem>>, vector<1x16x384xbf16>
    %8 = vector.shape_cast %7 : vector<1x16x384xbf16> to vector<16x384xbf16>
    %9 = tpu.concatenate %6, %8 in 1 : vector<16x384xbf16>, vector<16x384xbf16> -> vector<16x768xbf16>
    %c0_10 = arith.constant 0 : index
    %c0_11 = arith.constant 0 : index
    %c2 = arith.constant 2 : index
    %10 = vector.load %arg1[%c0_10, %c0_11, %c2] : memref<2x16x432xbf16, #tpu.memory_space<vmem>>, vector<1x16x384xbf16>
    %11 = vector.shape_cast %10 : vector<1x16x384xbf16> to vector<16x384xbf16>
    %c1_12 = arith.constant 1 : index
    %c0_13 = arith.constant 0 : index
    %c2_14 = arith.constant 2 : index
    %12 = vector.load %arg1[%c1_12, %c0_13, %c2_14] : memref<2x16x432xbf16, #tpu.memory_space<vmem>>, vector<1x16x384xbf16>
    %13 = vector.shape_cast %12 : vector<1x16x384xbf16> to vector<16x384xbf16>
    %14 = tpu.concatenate %11, %13 in 1 : vector<16x384xbf16>, vector<16x384xbf16> -> vector<16x768xbf16>
    %c0_15 = arith.constant 0 : index
    %c0_16 = arith.constant 0 : index
    %c18 = arith.constant 18 : index
    %15 = vector.load %arg1[%c0_15, %c0_16, %c18] : memref<2x16x432xbf16, #tpu.memory_space<vmem>>, vector<1x16x384xbf16>
    %16 = vector.shape_cast %15 : vector<1x16x384xbf16> to vector<16x384xbf16>
    %c1_17 = arith.constant 1 : index
    %c0_18 = arith.constant 0 : index
    %c18_19 = arith.constant 18 : index
    %17 = vector.load %arg1[%c1_17, %c0_18, %c18_19] : memref<2x16x432xbf16, #tpu.memory_space<vmem>>, vector<1x16x384xbf16>
    %18 = vector.shape_cast %17 : vector<1x16x384xbf16> to vector<16x384xbf16>
    %19 = tpu.concatenate %16, %18 in 1 : vector<16x384xbf16>, vector<16x384xbf16> -> vector<16x768xbf16>
    %c0_20 = arith.constant 0 : index
    %c0_21 = arith.constant 0 : index
    %c19 = arith.constant 19 : index
    %20 = vector.load %arg1[%c0_20, %c0_21, %c19] : memref<2x16x432xbf16, #tpu.memory_space<vmem>>, vector<1x16x384xbf16>
    %21 = vector.shape_cast %20 : vector<1x16x384xbf16> to vector<16x384xbf16>
    %c1_22 = arith.constant 1 : index
    %c0_23 = arith.constant 0 : index
    %c19_24 = arith.constant 19 : index
    %22 = vector.load %arg1[%c1_22, %c0_23, %c19_24] : memref<2x16x432xbf16, #tpu.memory_space<vmem>>, vector<1x16x384xbf16>
    %23 = vector.shape_cast %22 : vector<1x16x384xbf16> to vector<16x384xbf16>
    %24 = tpu.concatenate %21, %23 in 1 : vector<16x384xbf16>, vector<16x384xbf16> -> vector<16x768xbf16>
    %c0_25 = arith.constant 0 : index
    %c0_26 = arith.constant 0 : index
    %c20 = arith.constant 20 : index
    %25 = vector.load %arg1[%c0_25, %c0_26, %c20] : memref<2x16x432xbf16, #tpu.memory_space<vmem>>, vector<1x16x384xbf16>
    %26 = vector.shape_cast %25 : vector<1x16x384xbf16> to vector<16x384xbf16>
    %c1_27 = arith.constant 1 : index
    %c0_28 = arith.constant 0 : index
    %c20_29 = arith.constant 20 : index
    %27 = vector.load %arg1[%c1_27, %c0_28, %c20_29] : memref<2x16x432xbf16, #tpu.memory_space<vmem>>, vector<1x16x384xbf16>
    %28 = vector.shape_cast %27 : vector<1x16x384xbf16> to vector<16x384xbf16>
    %29 = tpu.concatenate %26, %28 in 1 : vector<16x384xbf16>, vector<16x384xbf16> -> vector<16x768xbf16>
    %c0_30 = arith.constant 0 : index
    %c0_31 = arith.constant 0 : index
    %c36 = arith.constant 36 : index
    %30 = vector.load %arg1[%c0_30, %c0_31, %c36] : memref<2x16x432xbf16, #tpu.memory_space<vmem>>, vector<1x16x384xbf16>
    %31 = vector.shape_cast %30 : vector<1x16x384xbf16> to vector<16x384xbf16>
    %c1_32 = arith.constant 1 : index
    %c0_33 = arith.constant 0 : index
    %c36_34 = arith.constant 36 : index
    %32 = vector.load %arg1[%c1_32, %c0_33, %c36_34] : memref<2x16x432xbf16, #tpu.memory_space<vmem>>, vector<1x16x384xbf16>
    %33 = vector.shape_cast %32 : vector<1x16x384xbf16> to vector<16x384xbf16>
    %34 = tpu.concatenate %31, %33 in 1 : vector<16x384xbf16>, vector<16x384xbf16> -> vector<16x768xbf16>
    %c0_35 = arith.constant 0 : index
    %c0_36 = arith.constant 0 : index
    %c37 = arith.constant 37 : index
    %35 = vector.load %arg1[%c0_35, %c0_36, %c37] : memref<2x16x432xbf16, #tpu.memory_space<vmem>>, vector<1x16x384xbf16>
    %36 = vector.shape_cast %35 : vector<1x16x384xbf16> to vector<16x384xbf16>
    %c1_37 = arith.constant 1 : index
    %c0_38 = arith.constant 0 : index
    %c37_39 = arith.constant 37 : index
    %37 = vector.load %arg1[%c1_37, %c0_38, %c37_39] : memref<2x16x432xbf16, #tpu.memory_space<vmem>>, vector<1x16x384xbf16>
    %38 = vector.shape_cast %37 : vector<1x16x384xbf16> to vector<16x384xbf16>
    %39 = tpu.concatenate %36, %38 in 1 : vector<16x384xbf16>, vector<16x384xbf16> -> vector<16x768xbf16>
    %c0_40 = arith.constant 0 : index
    %c0_41 = arith.constant 0 : index
    %c38 = arith.constant 38 : index
    %40 = vector.load %arg1[%c0_40, %c0_41, %c38] : memref<2x16x432xbf16, #tpu.memory_space<vmem>>, vector<1x16x384xbf16>
    %41 = vector.shape_cast %40 : vector<1x16x384xbf16> to vector<16x384xbf16>
    %c1_42 = arith.constant 1 : index
    %c0_43 = arith.constant 0 : index
    %c38_44 = arith.constant 38 : index
    %42 = vector.load %arg1[%c1_42, %c0_43, %c38_44] : memref<2x16x432xbf16, #tpu.memory_space<vmem>>, vector<1x16x384xbf16>
    %43 = vector.shape_cast %42 : vector<1x16x384xbf16> to vector<16x384xbf16>
    %44 = tpu.concatenate %41, %43 in 1 : vector<16x384xbf16>, vector<16x384xbf16> -> vector<16x768xbf16>
    %45 = tpu.concatenate %4, %9, %14, %19, %24, %29, %34, %39, %44 in 0 : vector<16x768xbf16>, vector<16x768xbf16>, vector<16x768xbf16>, vector<16x768xbf16>, vector<16x768xbf16>, vector<16x768xbf16>, vector<16x768xbf16>, vector<16x768xbf16>, vector<16x768xbf16> -> vector<144x768xbf16>
    %c0_45 = arith.constant 0 : index
    %c0_46 = arith.constant 0 : index
    %46 = vector.load %arg2[%c0_45, %c0_46] : memref<8x144xbf16, #tpu.memory_space<vmem>>, vector<8x144xbf16>
    %cst = arith.constant dense<0.000000e+00> : vector<8x768xf32>
    %47 = tpu.matmul %46, %45, %cst {dimension_numbers = #tpu.dot_dimension_numbers<[1], [0], [0], [1], [0, 0, 1, 1], [], []>} : vector<8x144xbf16>, vector<144x768xbf16>, vector<8x768xf32> -> vector<8x768xf32>
    %48 = vector.extract_strided_slice %47 {offsets = [0, 0], sizes = [8, 384], strides = [1, 1]} : vector<8x768xf32> to vector<8x384xf32>
    %c0_47 = arith.constant 0 : index
    %c0_48 = arith.constant 0 : index
    %c0_49 = arith.constant 0 : index
    %49 = vector.load %arg3[%c0_47, %c0_48, %c0_49] : memref<2x8x384xf32, #tpu.memory_space<vmem>>, vector<1x8x384xf32>
    %50 = vector.shape_cast %49 : vector<1x8x384xf32> to vector<8x384xf32>
    %51 = vector.shape_cast %48 : vector<8x384xf32> to vector<1x8x384xf32>
    tpu.vector_store %arg3[%c0_47, %c0_48, %c0_49], %51 {strides = array<i32>} : memref<2x8x384xf32, #tpu.memory_space<vmem>>, vector<1x8x384xf32>,
    %52 = vector.extract_strided_slice %47 {offsets = [0, 384], sizes = [8, 384], strides = [1, 1]} : vector<8x768xf32> to vector<8x384xf32>
    %c1_50 = arith.constant 1 : index
    %c0_51 = arith.constant 0 : index
    %c0_52 = arith.constant 0 : index
    %53 = vector.load %arg3[%c1_50, %c0_51, %c0_52] : memref<2x8x384xf32, #tpu.memory_space<vmem>>, vector<1x8x384xf32>
    %54 = vector.shape_cast %53 : vector<1x8x384xf32> to vector<8x384xf32>
    %55 = vector.shape_cast %52 : vector<8x384xf32> to vector<1x8x384xf32>
    tpu.vector_store %arg3[%c1_50, %c0_51, %c0_52], %55 {strides = array<i32>} : memref<2x8x384xf32, #tpu.memory_space<vmem>>, vector<1x8x384xf32>,
    return
  }
  func.func @transform_0(%arg0: i32) -> (i32, i32, i32) {
    %c0_i32 = arith.constant 0 : i32
    %c0_i32_0 = arith.constant 0 : i32
    %c0_i32_1 = arith.constant 0 : i32
    return %arg0, %c0_i32, %c0_i32_0 : i32, i32, i32
  }
  func.func @transform_1(%arg0: i32) -> (i32, i32) {
    %c0_i32 = arith.constant 0 : i32
    %c0_i32_0 = arith.constant 0 : i32
    %c0_i32_1 = arith.constant 0 : i32
    return %c0_i32, %c0_i32_0 : i32, i32
  }
  func.func @transform_2(%arg0: i32) -> (i32, i32, i32) {
    %c0_i32 = arith.constant 0 : i32
    %c0_i32_0 = arith.constant 0 : i32
    %c0_i32_1 = arith.constant 0 : i32
    return %arg0, %c0_i32, %c0_i32_0 : i32, i32, i32
  }
}

</mosaic_0001>

<bundles_post_ra>
// kernel: tpu_custom_call.1
= control target key start
LH: loop header
LB: loop body
LE: loop exit
PB: predicated region body
PF: predicated region fallthrough
CT: control target
= control target key end

     0   :  { %7 = vsyncpa [#allocation3], 0  ;;  %s960_s0 = inlined_call_operand.hbm [shape: bf16[2,16,432], index: 0, kind: input, shape index: {}]   ;;  %s961_s1 = inlined_call_operand.hbm [shape: bf16[8,144], index: 1, kind: input, shape index: {}]   ;;  %s962_s2 = inlined_call_operand.hbm [shape: f32[2,8,384], index: 2, kind: output, shape index: {}]  }
   0x1   :  { %8 = vsyncpa [#allocation6], 0 }
   0x2   :  { %9 = vsyncpa [#allocation4], 0  ;;  %s14_s11 = sshll.u32 %s960_s0, 4  ;;  %s679_s12 = smov [#allocation2]   ;;  %s15_s11 = int_to_ptr.hbm [resolvable:$true] %s14_s11 }
   0x3   :  { %s16_s13 = sshll.u32 %s679_s12, 4  ;;  %s28_s16 = sshll.u32 %s961_s1, 4  ;;  %s17_s13 = int_to_ptr.vmem [resolvable:$true] %s16_s13  ;;  %s29_s16 = int_to_ptr.hbm [resolvable:$true] %s28_s16 }
   0x4   :  { %s680_s17 = smov 256   ;;  %s681_s18 = smov 16  }
   0x5   :  { %22 = dma.hbm_to_vmem [thread:$0]  %s15_s11, 1024, %s17_s13, [#allocation3], %s680_s17, %s680_s17, %s681_s18  }
   0x6   :  { %s682_s19 = smov [#allocation5]  }
   0x7   :  { %s30_s20 = sshll.u32 %s682_s19, 4  ;;  %s31_s20 = int_to_ptr.vmem [resolvable:$true] %s30_s20 }
   0x8   :  { %33 = dma.hbm_to_vmem [thread:$0]  %s29_s16, 128, %s31_s20, [#allocation6]  }
   0x9   :  { %673 = dma.done.wait [#allocation3], 1024  }
   0xa   :  { %674 = vsyncadd [#allocation3], 4294966272 }
   0xb   :  { %675 = dma.done.wait [#allocation6], 128  }
   0xc   :  { %676 = vsyncadd [#allocation6], 4294967168  ;;  %v556_v0 = vld [vmem:[#allocation2 + $0x8] sm:$0xf]  ;;  %v583_v1 = vld [vmem:[#allocation2 + $0x14] sm:$0xf0] }
   0xd   :  { %v576_v2 = vld [vmem:[#allocation2 + $0x4] sm:$0xf]  ;;  %v557_v3 = vor.u32 %v583_v1, %v556_v0  ;;  %v534_v4 = vld [vmem:[#allocation2 + $0x10] sm:$0xf0]  ;;  %s683_s0 = smov 92   ;;  %s684_s1 = smov 91  }
   0xe   :  { %v715_v5 = vor.u32 %v576_v2, %v534_v4  ;;  %s685_s21 = smov 90   ;;  %v582_v6 = vld [vmem:[#allocation2 + $0xc] sm:$0xf]  ;;  %v558_v7 = vld [vmem:[#allocation2 + $0x18] sm:$0xf0]  ;;  %s686_s22 = smov 108  }
   0xf   :  { %253 = vrot.lane.b32.xlu1 %v557_v3, %s683_s0  ;;  %282 = vrot.lane.b32.xlu0 %v557_v3, %s684_s1  ;;  %v561_v8 = vor.u32 %v582_v6, %v558_v7  ;;  %v544_v9 = vld [vmem:[#allocation2 + $0x20] sm:$0xf]  ;;  %v580_v10 = vld [vmem:[#allocation2 + $0x2c] sm:$0xf0]  ;;  %v579_v11 = vld [vmem:[#allocation2 + $0x24] sm:$0xf] }
  0x10   :  { %309 = vrot.lane.b32.xlu2 %v715_v5, %s685_s21  ;;  %v546_v12 = vld [vmem:[#allocation2 + $0x30] sm:$0xf0]  ;;  %v728_v13 = vor.u32 %v580_v10, %v544_v9  ;;  %s687_s23 = smov 109   ;;  %v532_v15 = vld [vmem:[#allocation2] sm:$0xf]  ;;  %s688_s24 = smov 110  }
  0x11   :  { %v730_v14 = vor.u32 %v579_v11, %v546_v12  ;;  %v577_v16 = vld [vmem:[#allocation2 + $0xc] sm:$0xf0]  ;;  %s689_s25 = smov 126   ;;  %s690_s26 = smov 127   ;;  %v564_v18 = vld [vmem:[#allocation2 + $0x28] sm:$0xf] }
  0x12   :  { %v737_v17 = vor.u32 %v577_v16, %v532_v15  ;;  %v585_v19 = vld [vmem:[#allocation2 + $0x34] sm:$0xf0]  ;;  %vm315_vm0 = vcmask 736256   ;;  %v584_v24 = vld [vmem:[#allocation2 + $0x2c] sm:$0xf]  ;;  %vm286_vm1 = vcmask 744448  }
  0x13   :  { %v779_v21 = vor.u32 %v585_v19, %v564_v18  ;;  %v566_v25 = vld [vmem:[#allocation2 + $0x38] sm:$0xf0]  ;;  %vm257_vm2 = vcmask 752640   ;;  %v825_v36 = vld [vmem:[#allocation5] sm:$0xff]  ;;  %vm343_vm3 = vcmask 130048   ;;  %vm228_vm4 = vcmask 883712  }
  0x14   :  { %v799_v27 = vor.u32 %v584_v24, %v566_v25  ;;  %v339_v39 = vunpack.c.h.b16 %v825_v36  ;;  %vm199_vm5 = vcmask 891904   ;;  %vm170_vm6 = vcmask 900096   ;;  %s691_s27 = smov [#allocation7]   ;;  %s516_s3 = sshll.u32 %s962_s2, 4  ;;  %s517_s3 = int_to_ptr.hbm [resolvable:$true] %s516_s3 }
  0x15   :  { %vm141_vm7 = vcmask 1031168   ;;  %vm104_vm8 = vcmask 1039360   ;;  %s514_s28 = sshll.u32 %s691_s27, 4  ;;  %s692_s4 = smov 384   ;;  %s515_s28 = int_to_ptr.vmem [resolvable:$true] %s514_s28 }
  0x16   :  { %v830_v41 = vpack.c.b16 %v339_v39, %v339_v39  ;;  %s693_s5 = smov 24  }
  0x17   :  { %255 = vrot.lane.b32.xlu1 %v561_v8, %s683_s0  ;;  %284 = vrot.lane.b32.xlu0 %v561_v8, %s684_s1 }
  0x18   :  { %311 = vrot.lane.b32.xlu2 %v557_v3, %s685_s21 }
  0x1f   :  { %226 = vrot.lane.b32.xlu1 %v561_v8, %s686_s22  ;;  %224 = vrot.lane.b32.xlu0 %v557_v3, %s686_s22 }
  0x20   :  { %280 = vrot.lane.b32.xlu2 %v715_v5, %s684_s1 }
  0x27   :  { %293 = vrot.lane.b32.xlu0 %v728_v13, %s684_s1  ;;  %295 = vrot.lane.b32.xlu1 %v730_v14, %s684_s1 }
  0x28   :  { %195 = vrot.lane.b32.xlu2 %v557_v3, %s687_s23 }
  0x2f   :  { %197 = vrot.lane.b32.xlu0 %v561_v8, %s687_s23  ;;  %307 = vrot.lane.b32.xlu1 %v737_v17, %s685_s21 }
  0x30   :  { %251 = vrot.lane.b32.xlu2 %v715_v5, %s683_s0 }
  0x37   :  { %264 = vrot.lane.b32.xlu0 %v728_v13, %s683_s0  ;;  %266 = vrot.lane.b32.xlu1 %v730_v14, %s683_s0 }
  0x38   :  { %166 = vrot.lane.b32.xlu2 %v557_v3, %s688_s24 }
  0x3f   :  { %168 = vrot.lane.b32.xlu0 %v561_v8, %s688_s24  ;;  %278 = vrot.lane.b32.xlu1 %v737_v17, %s684_s1 }
  0x40   :  { %222 = vrot.lane.b32.xlu2 %v715_v5, %s686_s22 }
  0x47   :  { %235 = vrot.lane.b32.xlu0 %v728_v13, %s686_s22  ;;  %237 = vrot.lane.b32.xlu1 %v730_v14, %s686_s22 }
  0x48   :  { %137 = vrot.lane.b32.xlu2 %v557_v3, %s689_s25 }
  0x4f   :  { %139 = vrot.lane.b32.xlu0 %v561_v8, %s689_s25  ;;  %249 = vrot.lane.b32.xlu1 %v737_v17, %s683_s0 }
  0x50   :  { %193 = vrot.lane.b32.xlu2 %v715_v5, %s687_s23 }
  0x57   :  { %206 = vrot.lane.b32.xlu0 %v728_v13, %s687_s23  ;;  %208 = vrot.lane.b32.xlu1 %v730_v14, %s687_s23 }
  0x58   :  { %313 = vrot.lane.b32.xlu2 %v561_v8, %s685_s21 }
  0x5f   :  { %100 = vrot.lane.b32.xlu0 %v557_v3, %s690_s26  ;;  %102 = vrot.lane.b32.xlu1 %v561_v8, %s690_s26 }
  0x60   :  { %220 = vrot.lane.b32.xlu2 %v737_v17, %s686_s22 }
  0x67   :  { %177 = vrot.lane.b32.xlu1 %v728_v13, %s688_s24  ;;  %164 = vrot.lane.b32.xlu0 %v715_v5, %s688_s24 }
  0x68   :  { %179 = vrot.lane.b32.xlu2 %v730_v14, %s688_s24 }
  0x6a   :  { %v310_v20 = vpop.permute.xlu2 %309 }
  0x6f   :  { %191 = vrot.lane.b32.xlu1 %v737_v17, %s687_s23  ;;  %297 = vrot.lane.b32.xlu0 %v779_v21, %s684_s1 }
  0x70   :  { %135 = vrot.lane.b32.xlu2 %v715_v5, %s689_s25 }
  0x72   :  { %v787_v22 = vpop.permute.xlu2 %311 }
  0x73   :  { %v317_v23 = vsel %vm315_vm0, %v310_v20, %v787_v22 }
  0x74   :  { %393 = vmatpush.bf16.msra.mxu3 %v317_v23 }
  0x77   :  { %150 = vrot.lane.b32.xlu1 %v730_v14, %s689_s25  ;;  %148 = vrot.lane.b32.xlu0 %v728_v13, %s689_s25 }
  0x78   :  { %268 = vrot.lane.b32.xlu2 %v779_v21, %s683_s0  ;;  %571 = vmatmul.msk.bf16.vlgmr.msra.gmra.mxu3 %vm343_vm3, %v830_v41 }
  0x7a   :  { %v797_v26 = vpop.permute.xlu2 %280 }
  0x7f   :  { %299 = vrot.lane.b32.xlu1 %v799_v27, %s684_s1  ;;  %162 = vrot.lane.b32.xlu0 %v737_v17, %s688_s24 }
  0x80   :  { %98 = vrot.lane.b32.xlu2 %v715_v5, %s690_s26 }
  0x81   :  { %v254_v28 = vpop.permute.xlu1 %253  ;;  %v283_v29 = vpop.permute.xlu0 %282 }
  0x82   :  { %v196_v30 = vpop.permute.xlu2 %195  ;;  %v288_v31 = vsel %vm286_vm1, %v797_v26, %v283_v29 }
  0x83   :  { %373 = vmatpush.bf16.msra.mxu2 %v288_v31 }
  0x87   :  { %121 = vrot.lane.b32.xlu1 %v730_v14, %s690_s26  ;;  %119 = vrot.lane.b32.xlu0 %v728_v13, %s690_s26 }
  0x88   :  { %239 = vrot.lane.b32.xlu2 %v779_v21, %s686_s22 }
  0x89   :  { %v256_v32 = vpop.permute.xlu1 %255  ;;  %v285_v33 = vpop.permute.xlu0 %284 }
  0x8a   :  { %v815_v34 = vpop.permute.xlu2 %251  ;;  %v289_v50 = vsel %vm286_vm1, %v283_v29, %v285_v33  ;;  %v260_v51 = vsel %vm257_vm2, %v254_v28, %v256_v32 }
  0x8b   :  { %v259_v35 = vsel %vm257_vm2, %v815_v34, %v254_v28 }
  0x8c   :  { %374 = vmatpush.bf16.msra.mxu2 %v259_v35  ;;  %v338_v35 = vunpack.c.l.b16 %v825_v36 }
  0x8f   :  { %270 = vrot.lane.b32.xlu1 %v799_v27, %s683_s0  ;;  %133 = vrot.lane.b32.xlu0 %v737_v17, %s689_s25 }
  0x90   :  { %210 = vrot.lane.b32.xlu2 %v779_v21, %s687_s23 }
  0x91   :  { %v227_v37 = vpop.permute.xlu1 %226  ;;  %v225_v38 = vpop.permute.xlu0 %224 }
  0x92   :  { %v828_v40 = vpop.permute.xlu2 %166  ;;  %v231_v56 = vsel %vm228_vm4, %v225_v38, %v227_v37  ;;  %v540_v37 = vld [vmem:[#allocation2 + $0x8] sm:$0xf] }
  0x97   :  { %241 = vrot.lane.b32.xlu1 %v799_v27, %s686_s22  ;;  %96 = vrot.lane.b32.xlu0 %v737_v17, %s690_s26 }
  0x98   :  { %181 = vrot.lane.b32.xlu2 %v779_v21, %s688_s24 }
  0x99   :  { %v294_v42 = vpop.permute.xlu0 %293  ;;  %v840_v43 = vpop.permute.xlu1 %295 }
  0x9a   :  { %v842_v44 = vpop.permute.xlu2 %222  ;;  %v301_v0 = vsel %vm286_vm1, %v294_v42, %v840_v43 }
  0x9b   :  { %v230_v45 = vsel %vm228_vm4, %v842_v44, %v225_v38  ;;  %v578_v38 = vld [vmem:[#allocation2 + $0x14] sm:$0xf0] }
  0x9c   :  { %375 = vmatpush.bf16.msra.mxu2 %v230_v45  ;;  %v541_v39 = vor.u32 %v578_v38, %v540_v37 }
  0x9f   :  { %324 = vrot.lane.b32.xlu1 %v730_v14, %s685_s21  ;;  %212 = vrot.lane.b32.xlu0 %v799_v27, %s687_s23 }
  0xa0   :  { %326 = vrot.lane.b32.xlu2 %v779_v21, %s685_s21 }
  0xa1   :  { %v198_v46 = vpop.permute.xlu0 %197  ;;  %v308_v47 = vpop.permute.xlu1 %307 }
  0xa2   :  { %v852_v48 = vpop.permute.xlu2 %137  ;;  %v316_v49 = vsel %vm315_vm0, %v308_v47, %v310_v20  ;;  %v202_v57 = vsel %vm199_vm5, %v196_v30, %v198_v46 }
  0xa3   :  { %367 = vmatpush.bf16.msra.mxu1 %v316_v49 }
  0xa6   :  { %570 = vmatmul.msk.bf16.vlgmr.msra.gmra.mxu1 %vm343_vm3, %v830_v41 }
  0xa7   :  { %399 = vmatpush.bf16.msrb.mxu1 %v289_v50  ;;  %183 = vrot.lane.b32.xlu1 %v799_v27, %s688_s24 }
  0xa8   :  { %152 = vrot.lane.b32.xlu0 %v779_v21, %s689_s25  ;;  %123 = vrot.lane.b32.xlu2 %v779_v21, %s690_s26 }
  0xa9   :  { %v265_v52 = vpop.permute.xlu0 %264  ;;  %v865_v53 = vpop.permute.xlu1 %266 }
  0xaa   :  { %v867_v54 = vpop.permute.xlu2 %193  ;;  %v272_v1 = vsel %vm257_vm2, %v265_v52, %v865_v53 }
  0xab   :  { %400 = vmatpush.bf16.msrb.mxu1 %v260_v51  ;;  %v201_v55 = vsel %vm199_vm5, %v867_v54, %v196_v30 }
  0xac   :  { %376 = vmatpush.bf16.msra.mxu2 %v201_v55 }
  0xaf   :  { %401 = vmatpush.bf16.msrb.mxu1 %v231_v56  ;;  %322 = vrot.lane.b32.xlu1 %v728_v13, %s685_s21 }
  0xb0   :  { %154 = vrot.lane.b32.xlu0 %v799_v27, %s689_s25  ;;  %125 = vrot.lane.b32.xlu2 %v799_v27, %s690_s26 }
  0xb1   :  { %v169_v58 = vpop.permute.xlu0 %168  ;;  %v279_v59 = vpop.permute.xlu1 %278 }
  0xb2   :  { %v314_v60 = vpop.permute.xlu2 %313  ;;  %v287_v61 = vsel %vm286_vm1, %v279_v59, %v797_v26  ;;  %v173_v62 = vsel %vm170_vm6, %v828_v40, %v169_v58 }
  0xb3   :  { %402 = vmatpush.bf16.msrb.mxu1 %v202_v57  ;;  %347 = vmatpush.bf16.msra.mxu0 %v287_v61  ;;  %v318_v63 = vsel %vm315_vm0, %v787_v22, %v314_v60 }
  0xb4   :  { %419 = vmatpush.bf16.msrb.mxu3 %v318_v63 }
  0xb7   :  { %403 = vmatpush.bf16.msrb.mxu1 %v173_v62  ;;  %572 = vmatmul.msk.bf16.vlgmr.msrb.gmra.mxu3 %vm343_vm3, %v830_v41 }
  0xb8   :  { %425 = vmatpush.bf16.msra.mxu3 %v301_v0  ;;  %328 = vrot.lane.b32.xlu0 %v799_v27, %s685_s21 }
  0xb9   :  { %v236_v2 = vpop.permute.xlu0 %235  ;;  %v238_v3 = vpop.permute.xlu1 %237 }
  0xba   :  { %v221_v4 = vpop.permute.xlu2 %220  ;;  %v243_v6 = vsel %vm228_vm4, %v236_v2, %v238_v3 }
  0xbb   :  { %v229_v12 = vsel %vm228_vm4, %v221_v4, %v842_v44 }
  0xbc   :  { %426 = vmatpush.bf16.msra.mxu3 %v272_v1 }
  0xc0   :  { %427 = vmatpush.bf16.msra.mxu3 %v243_v6 }
  0xc1   :  { %v140_v7 = vpop.permute.xlu0 %139  ;;  %v250_v8 = vpop.permute.xlu1 %249 }
  0xc2   :  { %v180_v9 = vpop.permute.xlu2 %179  ;;  %v258_v10 = vsel %vm257_vm2, %v250_v8, %v815_v34  ;;  %v144_v11 = vsel %vm141_vm7, %v852_v48, %v140_v7 }
  0xc3   :  { %348 = vmatpush.bf16.msra.mxu0 %v258_v10  ;;  %404 = vmatpush.bf16.msrb.mxu1 %v144_v11 }
  0xc7   :  { %349 = vmatpush.bf16.msra.mxu0 %v229_v12 }
  0xc9   :  { %v207_v15 = vpop.permute.xlu0 %206  ;;  %v209_v16 = vpop.permute.xlu1 %208 }
  0xca   :  { %v136_v18 = vpop.permute.xlu2 %135  ;;  %v214_v19 = vsel %vm199_vm5, %v207_v15, %v209_v16 }
  0xcb   :  { %428 = vmatpush.bf16.msra.mxu3 %v214_v19  ;;  %v143_v29 = vsel %vm141_vm7, %v136_v18, %v852_v48 }
  0xd1   :  { %v101_v20 = vpop.permute.xlu0 %100  ;;  %v103_v21 = vpop.permute.xlu1 %102 }
  0xd2   :  { %v901_v22 = vpop.permute.xlu2 %268  ;;  %v107_v23 = vsel %vm104_vm8, %v101_v20, %v103_v21 }
  0xd3   :  { %405 = vmatpush.bf16.msrb.mxu1 %v107_v23  ;;  %v273_v47 = vsel %vm257_vm2, %v865_v53, %v901_v22  ;;  %v581_v23 = vld [vmem:[#allocation2 + $0x34] sm:$0xf0] }
  0xd7   :  { %406 = vmatpush.bf16.msrb.mxu1 %v541_v39 }
  0xd9   :  { %v178_v24 = vpop.permute.xlu1 %177  ;;  %v165_v25 = vpop.permute.xlu0 %164 }
  0xda   :  { %v99_v26 = vpop.permute.xlu2 %98  ;;  %v172_v27 = vsel %vm170_vm6, %v165_v25, %v828_v40  ;;  %v185_v28 = vsel %vm170_vm6, %v178_v24, %v180_v9  ;;  %v913_v40 = vpack.c.b16 %v338_v35, %v338_v35 }
  0xdb   :  { %377 = vmatpush.bf16.msra.mxu2 %v172_v27  ;;  %429 = vmatpush.bf16.msra.mxu3 %v185_v28  ;;  %v106_v34 = vsel %vm104_vm8, %v99_v26, %v101_v20 }
  0xdc   :  { %407 = vmatmul.bf16.vlgmr.msrb.gmra.mxu1 %v913_v40 }
  0xdf   :  { %378 = vmatpush.bf16.msra.mxu2 %v143_v29 }
  0xe1   :  { %v192_v30 = vpop.permute.xlu1 %191  ;;  %v298_v31 = vpop.permute.xlu0 %297 }
  0xe2   :  { %v240_v32 = vpop.permute.xlu2 %239  ;;  %v200_v33 = vsel %vm199_vm5, %v192_v30, %v867_v54  ;;  %v302_v42 = vsel %vm286_vm1, %v840_v43, %v298_v31 }
  0xe3   :  { %350 = vmatpush.bf16.msra.mxu0 %v200_v33  ;;  %379 = vmatpush.bf16.msra.mxu2 %v106_v34 }
  0xe7   :  { %380 = vmatpush.bf16.msra.mxu2 %v715_v5  ;;  %v244_v5 = vsel %vm228_vm4, %v238_v3, %v240_v32 }
  0xe9   :  { %v151_v44 = vpop.permute.xlu1 %150  ;;  %v149_v45 = vpop.permute.xlu0 %148 }
  0xea   :  { %v211_v46 = vpop.permute.xlu2 %210  ;;  %v156_v36 = vsel %vm141_vm7, %v149_v45, %v151_v44  ;;  %381 = vmatmul.bf16.vlgmr.msra.gmra.mxu2 %v913_v40 }
  0xeb   :  { %451 = vmatpush.bf16.msrb.mxu2 %v302_v42  ;;  %430 = vmatpush.bf16.msra.mxu3 %v156_v36  ;;  %v215_v50 = vsel %vm199_vm5, %v209_v16, %v211_v46 }
  0xef   :  { %452 = vmatpush.bf16.msrb.mxu2 %v273_v47 }
  0xf1   :  { %v300_v43 = vpop.permute.xlu1 %299  ;;  %v163_v48 = vpop.permute.xlu0 %162 }
  0xf2   :  { %v171_v49 = vsel %vm170_vm6, %v163_v48, %v165_v25  ;;  %v182_v51 = vpop.permute.xlu2 %181  ;;  %v303_v62 = vsel %vm286_vm1, %v298_v31, %v300_v43 }
  0xf3   :  { %453 = vmatpush.bf16.msrb.mxu2 %v244_v5  ;;  %351 = vmatpush.bf16.msra.mxu0 %v171_v49  ;;  %v186_v52 = vsel %vm170_vm6, %v180_v9, %v182_v51 }
  0xf7   :  { %454 = vmatpush.bf16.msrb.mxu2 %v215_v50 }
  0xf9   :  { %v122_v54 = vpop.permute.xlu1 %121  ;;  %v120_v55 = vpop.permute.xlu0 %119 }
  0xfa   :  { %v127_v53 = vsel %vm104_vm8, %v120_v55, %v122_v54  ;;  %v327_v63 = vpop.permute.xlu2 %326 }
  0xfb   :  { %455 = vmatpush.bf16.msrb.mxu2 %v186_v52  ;;  %431 = vmatpush.bf16.msra.mxu3 %v127_v53  ;;  %v395_v3 = vpop.f32.mrf.mxu3 }
  0xff   :  { %432 = vmatpush.bf16.msra.mxu3 %v728_v13 }
 0x101   :  { %v271_v56 = vpop.permute.xlu1 %270  ;;  %v134_v57 = vpop.permute.xlu0 %133 }
 0x102   :  { %v142_v58 = vsel %vm141_vm7, %v134_v57, %v136_v18  ;;  %433 = vmatmul.bf16.vlgmr.msra.gmra.mxu3 %v913_v40  ;;  %v274_v2 = vsel %vm257_vm2, %v901_v22, %v271_v56  ;;  %v124_v8 = vpop.permute.xlu2 %123  ;;  %v552_v22 = vld [vmem:[#allocation2 + $0x28] sm:$0xf] }
 0x103   :  { %352 = vmatpush.bf16.msra.mxu0 %v142_v58  ;;  %v128_v10 = vsel %vm104_vm8, %v122_v54, %v124_v8  ;;  %v397_v12 = vpop.f32.mrf.mxu3  ;;  %v553_v25 = vor.u32 %v581_v23, %v552_v22 }
 0x109   :  { %v242_v59 = vpop.permute.xlu1 %241  ;;  %v97_v60 = vpop.permute.xlu0 %96 }
 0x10a   :  { %v105_v61 = vsel %vm104_vm8, %v97_v60, %v99_v26  ;;  %v126_v21 = vpop.permute.xlu2 %125 }
 0x10b   :  { %353 = vmatpush.bf16.msra.mxu0 %v105_v61  ;;  %v129_v24 = vsel %vm104_vm8, %v124_v8, %v126_v21 }
 0x10f   :  { %354 = vmatpush.bf16.msra.mxu0 %v737_v17  ;;  %v245_v17 = vsel %vm228_vm4, %v240_v32, %v242_v59 }
 0x111   :  { %v325_v0 = vpop.permute.xlu1 %324  ;;  %v213_v13 = vpop.permute.xlu0 %212 }
 0x112   :  { %v331_v1 = vsel %vm315_vm0, %v325_v0, %v327_v63  ;;  %355 = vmatmul.bf16.vlgmr.msra.gmra.mxu0 %v913_v40  ;;  %v216_v9 = vsel %vm199_vm5, %v211_v46, %v213_v13 }
 0x113   :  { %477 = vmatpush.bf16.msrb.mxu0 %v303_v62  ;;  %471 = vmatpush.bf16.msra.mxu1 %v331_v1 }
 0x116   :  { %574 = vmatmul.msk.bf16.vlgmr.msra.gmra.mxu1 %vm343_vm3, %v830_v41 }
 0x117   :  { %478 = vmatpush.bf16.msrb.mxu0 %v274_v2 }
 0x119   :  { %v184_v4 = vpop.permute.xlu1 %183 }
 0x11a   :  { %v153_v6 = vpop.permute.xlu0 %152  ;;  %v187_v11 = vsel %vm170_vm6, %v182_v51, %v184_v4 }
 0x11b   :  { %479 = vmatpush.bf16.msrb.mxu0 %v245_v17  ;;  %v157_v7 = vsel %vm141_vm7, %v151_v44, %v153_v6 }
 0x11c   :  { %456 = vmatpush.bf16.msrb.mxu2 %v157_v7 }
 0x11f   :  { %480 = vmatpush.bf16.msrb.mxu0 %v216_v9 }
 0x120   :  { %457 = vmatpush.bf16.msrb.mxu2 %v128_v10 }
 0x121   :  { %v323_v15 = vpop.permute.xlu1 %322 }
 0x122   :  { %v155_v16 = vpop.permute.xlu0 %154  ;;  %v330_v18 = vsel %vm315_vm0, %v323_v15, %v325_v0 }
 0x123   :  { %481 = vmatpush.bf16.msrb.mxu0 %v187_v11  ;;  %v158_v19 = vsel %vm141_vm7, %v153_v6, %v155_v16  ;;  %445 = vmatpush.bf16.msrb.mxu3 %v330_v18  ;;  %v369_v20 = vpop.f32.mrf.mxu1 }
 0x124   :  { %458 = vmatpush.bf16.msrb.mxu2 %v730_v14 }
 0x126   :  { %573 = vmatmul.msk.bf16.vlgmr.msrb.gmra.mxu3 %vm343_vm3, %v830_v41 }
 0x127   :  { %482 = vmatpush.bf16.msrb.mxu0 %v158_v19  ;;  %459 = vmatmul.bf16.vlgmr.msrb.gmra.mxu2 %v913_v40 }
 0x12a   :  { %v329_v26 = vpop.permute.xlu0 %328 }
 0x12b   :  { %483 = vmatpush.bf16.msrb.mxu0 %v129_v24  ;;  %v332_v27 = vsel %vm315_vm0, %v327_v63, %v329_v26  ;;  %v371_v28 = vpop.f32.mrf.mxu1 }
 0x12c   :  { %497 = vmatpush.bf16.msrb.mxu1 %v332_v27 }
 0x12f   :  { %484 = vmatpush.bf16.msrb.mxu0 %v553_v25  ;;  %575 = vmatmul.msk.bf16.vlgmr.msrb.gmra.mxu1 %vm343_vm3, %v830_v41 }
 0x132   :  { %485 = vmatmul.bf16.vlgmr.msrb.gmra.mxu0 %v913_v40 }
 0x13a   :  { %v421_v14 = vpop.f32.mrf.mxu3 }
 0x142   :  { %v423_v29 = vpop.f32.mrf.mxu3 }
 0x159   :  { %v408_v30 = vpop.f32.mrf.mxu1 }
 0x15a   :  { %v422_v34 = vadd.f32 %v421_v14, %v408_v30 }
 0x15c   :  { %505 = vst [vmem:[#allocation7 + $0x10] sm:$0xff] %v422_v34 }
 0x161   :  { %v410_v32 = vpop.f32.mrf.mxu1 }
 0x16d   :  { %v382_v31 = vpop.f32.mrf.mxu2 }
 0x16e   :  { %v396_v33 = vadd.f32 %v395_v3, %v382_v31 }
 0x170   :  { %504 = vst [vmem:[#allocation7 + $0x8] sm:$0xff] %v396_v33 }
 0x175   :  { %v384_v35 = vpop.f32.mrf.mxu2 }
 0x185   :  { %v434_v37 = vpop.f32.mrf.mxu3 }
 0x18d   :  { %v436_v38 = vpop.f32.mrf.mxu3 }
 0x18f   :  { %v356_v39 = vpop.f32.mrf.mxu0 }
 0x190   :  { %v370_v42 = vadd.f32 %v369_v20, %v356_v39 }
 0x192   :  { %503 = vst [vmem:[#allocation7] sm:$0xff] %v370_v42 }
 0x193   :  { %v473_v44 = vpop.f32.mrf.mxu1 }
 0x197   :  { %v358_v45 = vpop.f32.mrf.mxu0 }
 0x19b   :  { %v475_v41 = vpop.f32.mrf.mxu1 }
 0x1a9   :  { %v447_v46 = vpop.f32.mrf.mxu3 }
 0x1aa   :  { %v460_v40 = vpop.f32.mrf.mxu2  ;;  %v448_v36 = vadd.f32 %v447_v46, %v434_v37 }
 0x1ab   :  { %v474_v47 = vadd.f32 %v473_v44, %v460_v40 }
 0x1ac   :  { %v499_v5 = vpop.f32.mrf.mxu1  ;;  %507 = vst [vmem:[#allocation7 + $0x18] sm:$0xff] %v448_v36 }
 0x1ad   :  { %508 = vst [vmem:[#allocation7 + $0x20] sm:$0xff] %v474_v47 }
 0x1af   :  { %v486_v43 = vpop.f32.mrf.mxu0 }
 0x1b0   :  { %v500_v48 = vadd.f32 %v499_v5, %v486_v43 }
 0x1b1   :  { %v449_v49 = vpop.f32.mrf.mxu3 }
 0x1b2   :  { %509 = vst [vmem:[#allocation7 + $0x28] sm:$0xff] %v500_v48  ;;  %v462_v50 = vpop.f32.mrf.mxu2 }
 0x1b3   :  { %522 = dma.vmem_to_hbm [thread:$0]  %s515_s28, 768, %s517_s3, [#allocation4], %s692_s4, %s692_s4, %s693_s5  }
 0x1b4   :  { %v501_v51 = vpop.f32.mrf.mxu1 }
 0x1b7   :  { %v488_v52 = vpop.f32.mrf.mxu0 }
 0x1b8   :  { %677 = dma.done.wait [#allocation4], 768  }
 0x1b9   :  { %678 = vsyncadd [#allocation4], 4294966528 }
 0x1ba   :  { %527 = vsyncpa [#allocation3], 1 }
 0x1bb   :  { %528 = vsyncpa [#allocation6], 1 }
 0x1bc   :  { %529 = vsyncpa [#allocation4], 1 }

</bundles_post_ra>
